<compile_context>
chip_gen: v7x
topology: tpu7x:2x2x1
jax: 0.10.0
libtpu: 0.0.40
codegen_flags: <defaults>
</compile_context>

<pallas_src>
import functools
import math

import jax
import jax.numpy as jnp
from jax.experimental import pallas as pl
from jax.experimental.pallas import tpu as pltpu


def _depthwise_lane_dense(v, taps_ref, row_ok, lane_ok, K, P, C, init=None):
    """Depthwise KxK conv (SAME, zero pad) on a lane-dense (H, W*C) value.

    taps_ref: (K*K, W*C) ref; row (di*K+dj) holds the (di,dj) tap repeated W
      times along the lane axis.
    row_ok[di] / lane_ok[dj]: precomputed boolean (H, W*C) validity masks
      (None for the zero-offset entry, which is trivially all-true).
    init: optional (1, W*C) bias to seed the accumulator with.
    """
    H, WC = v.shape
    acc = jnp.zeros((H, WC), jnp.float32) if init is None else init
    for di in range(K):
        oi = di - P
        s_row = v if oi == 0 else jnp.roll(v, -oi, axis=0)
        for dj in range(K):
            oj = dj - P
            s = s_row if oj == 0 else jnp.roll(s_row, -oj * C, axis=1)
            # Zero-pad semantics: mask out-of-image taps; skip all-true masks.
            if oi == 0 and oj == 0:
                sm = s
            elif oi == 0:
                sm = jnp.where(lane_ok[dj], s, 0.0)
            elif oj == 0:
                sm = jnp.where(row_ok[di], s, 0.0)
            else:
                sm = jnp.where(row_ok[di] & lane_ok[dj], s, 0.0)
            tap = taps_ref[pl.ds(di * K + dj, 1), :]          # (1, W*C)
            acc = acc + sm * tap
    return acc


def addconv_kernel(x_ref, wpw_ref, bpw_ref, wdw_ref, bdw_ref, w1_ref, w2_ref,
                   o_ref, *, K, H, W, C):
    """One batch element per grid step; activations lane-dense (H, W*C)."""
    P = (K - 1) // 2
    WC = W * C

    # Hoisted boundary masks, shared by both depthwise passes.
    row = jax.lax.broadcasted_iota(jnp.int32, (H, WC), 0)
    lane = jax.lax.broadcasted_iota(jnp.int32, (H, WC), 1)
    row_ok = [None] * K
    lane_ok = [None] * K
    for d in range(K):
        o = d - P
        if o != 0:
            row_ok[d] = ((row + o) >= 0) & ((row + o) < H)
            lane_ok[d] = ((lane + o * C) >= 0) & ((lane + o * C) < WC)

    # ---- 1) point-wise 1x1 conv + bias, lane-dense:
    #         (H, W*Cin) @ kron(I_W, Wpw) -> (H, W*Cout)
    x = x_ref[0]                                              # (H, W*Cin)
    t = jnp.dot(x, wpw_ref[...],
                preferred_element_type=jnp.float32) + bpw_ref[...]

    # ---- 2) depth-wise KxK conv + bias -> Blue (bias folded into acc init)
    blue = _depthwise_lane_dense(t, wdw_ref, row_ok, lane_ok, K, P, C,
                                 init=bdw_ref[...])

    # ---- 3) depth-wise KxK conv with `weight` (no bias)
    d2 = _depthwise_lane_dense(blue, w1_ref, row_ok, lane_ok, K, P, C)

    # ---- 4) point-wise 1x1 conv with `weight_2` (no bias), lane-dense
    b2 = jnp.dot(d2, w2_ref[...], preferred_element_type=jnp.float32)

    # ---- 5) residual add; single full-lane-width store
    o_ref[0] = (blue + b2).astype(o_ref.dtype)


def addconv_forward(x, wpw, bpw, wdw, bdw, w1, w2, K):
    """x: (B, H, W, Cin) NHWC float32.  Returns (B, H, W, Cout)."""
    assert K % 2 == 1, "addconv assumes odd kernel_size (symmetric SAME pad)"
    B, H, W, Cin = x.shape
    Cout = wpw.shape[1]

    # Free (contiguous) wrapper-side reshapes / weight preprocessing to the
    # lane-dense layouts consumed by the kernel.
    x_wide = x.reshape(B, H, W * Cin)
    eye_w = jnp.eye(W, dtype=wpw.dtype)
    wpw_bd = jnp.kron(eye_w, wpw)                      # (W*Cin, W*Cout)
    w2_bd = jnp.kron(eye_w, w2)                        # (W*Cout, W*Cout)
    bpw_t = jnp.tile(bpw.reshape(1, Cout), (1, W))     # (1, W*Cout)
    bdw_t = jnp.tile(bdw.reshape(1, Cout), (1, W))     # (1, W*Cout)
    wdw_t = jnp.tile(wdw, (1, W))                      # (K*K, W*Cout)
    w1_t = jnp.tile(w1, (1, W))                        # (K*K, W*Cout)

    kernel = functools.partial(addconv_kernel, K=K, H=H, W=W, C=Cout)
    out_wide = pl.pallas_call(
        kernel,
        out_shape=jax.ShapeDtypeStruct((B, H, W * Cout), x.dtype),
        grid_spec=pltpu.PrefetchScalarGridSpec(
            num_scalar_prefetch=0,
            grid=(B,),
            in_specs=[
                pl.BlockSpec((1, H, W * Cin), lambda b: (b, 0, 0)),
                pl.BlockSpec((W * Cin, W * Cout), lambda b: (0, 0)),
                pl.BlockSpec((1, W * Cout), lambda b: (0, 0)),
                pl.BlockSpec((K * K, W * Cout), lambda b: (0, 0)),
                pl.BlockSpec((1, W * Cout), lambda b: (0, 0)),
                pl.BlockSpec((K * K, W * Cout), lambda b: (0, 0)),
                pl.BlockSpec((W * Cout, W * Cout), lambda b: (0, 0)),
            ],
            out_specs=pl.BlockSpec((1, H, W * Cout), lambda b: (b, 0, 0)),
        ),
        compiler_params=pltpu.CompilerParams(
            dimension_semantics=("parallel",)),
    )(x_wide, wpw_bd, bpw_t, wdw_t, bdw_t, w1_t, w2_bd)
    return out_wide.reshape(B, H, W, Cout)


def ref_forward(x, wpw, bpw, wdw, bdw, w1, w2, K):
    """Plain-JAX reference (lax conv) for correctness check."""
    Cin, Cout = wpw.shape
    dn = ("NHWC", "HWIO", "NHWC")
    t = jax.lax.conv_general_dilated(
        x, wpw.reshape(1, 1, Cin, Cout), (1, 1), "VALID",
        dimension_numbers=dn) + bpw.reshape(1, 1, 1, Cout)
    t = jax.lax.conv_general_dilated(
        t, wdw.reshape(K, K, 1, Cout), (1, 1), "SAME",
        dimension_numbers=dn, feature_group_count=Cout)
    t = t + bdw.reshape(1, 1, 1, Cout)
    b = jax.lax.conv_general_dilated(
        t, w1.reshape(K, K, 1, Cout), (1, 1), "SAME",
        dimension_numbers=dn, feature_group_count=Cout)
    b = jax.lax.conv_general_dilated(
        b, w2.reshape(1, 1, Cout, Cout), (1, 1), "VALID",
        dimension_numbers=dn)
    return t + b


if __name__ == "__main__":
    B, Cin, Cout, H, W, K = 2, 4, 8, 16, 16, 3
    key = jax.random.PRNGKey(0)
    ks = jax.random.split(key, 7)

    # Deterministic synthetic parameters (matching the module's shapes:
    # point_wise 1x1 w/ bias, depth_wise kxk w/ bias, `weight` std=1e-4,
    # `weight_2` std=1e-4).  Activations in NHWC.
    x = jax.random.normal(ks[0], (B, H, W, Cin), jnp.float32)
    wpw = jax.random.normal(ks[1], (Cin, Cout), jnp.float32) / math.sqrt(Cin)
    bpw = jax.random.normal(ks[2], (1, Cout), jnp.float32) * 0.1
    wdw = jax.random.normal(ks[3], (K * K, Cout), jnp.float32) / math.sqrt(K * K)
    bdw = jax.random.normal(ks[4], (1, Cout), jnp.float32) * 0.1
    w1 = jax.random.normal(ks[5], (K * K, Cout), jnp.float32) * 1e-4
    w2 = jax.random.normal(ks[6], (Cout, Cout), jnp.float32) * 1e-4

    out = addconv_forward(x, wpw, bpw, wdw, bdw, w1, w2, K)
    jax.block_until_ready(out)

    ref = ref_forward(x, wpw, bpw, wdw, bdw, w1, w2, K)
    assert out.shape == (B, H, W, Cout)
    assert jnp.allclose(out, ref, rtol=1e-4, atol=1e-4), float(
        jnp.max(jnp.abs(out - ref)))
    print("KERNEL_OK")
</pallas_src>

<mosaic_0001>
module attributes {stable_mosaic.version = 11 : i64} {
  func.func @addconv_kernel(%arg0: i32, %arg1: memref<1x16x64xf32, #tpu.memory_space<vmem>>, %arg2: memref<64x128xf32, #tpu.memory_space<vmem>>, %arg3: memref<1x128xf32, #tpu.memory_space<vmem>>, %arg4: memref<9x128xf32, #tpu.memory_space<vmem>>, %arg5: memref<1x128xf32, #tpu.memory_space<vmem>>, %arg6: memref<9x128xf32, #tpu.memory_space<vmem>>, %arg7: memref<128x128xf32, #tpu.memory_space<vmem>>, %arg8: memref<1x16x128xf32, #tpu.memory_space<vmem>>) attributes {dimension_semantics = [#tpu.dimension_semantics<parallel>], iteration_bounds = array<i64: 2>, scalar_prefetch = 0 : i64, scratch_operands = 0 : i64, tpu.core_type = #tpu.core_type<tc>, window_params = [{transform_indices = @transform_0, window_bounds = array<i64: 1, 16, 64>}, {pipeline_mode = #tpu.pipeline_mode<synchronous>, transform_indices = @transform_1, window_bounds = array<i64: 64, 128>}, {pipeline_mode = #tpu.pipeline_mode<synchronous>, transform_indices = @transform_2, window_bounds = array<i64: 1, 128>}, {pipeline_mode = #tpu.pipeline_mode<synchronous>, transform_indices = @transform_3, window_bounds = array<i64: 9, 128>}, {pipeline_mode = #tpu.pipeline_mode<synchronous>, transform_indices = @transform_4, window_bounds = array<i64: 1, 128>}, {pipeline_mode = #tpu.pipeline_mode<synchronous>, transform_indices = @transform_5, window_bounds = array<i64: 9, 128>}, {pipeline_mode = #tpu.pipeline_mode<synchronous>, transform_indices = @transform_6, window_bounds = array<i64: 128, 128>}, {transform_indices = @transform_7, window_bounds = array<i64: 1, 16, 128>}]} {
    %0 = tpu.iota {dimensions = array<i32: 0>} : vector<16x128xi32>
    %1 = tpu.iota {dimensions = array<i32: 1>} : vector<16x128xi32>
    %c-1_i32 = arith.constant -1 : i32
    %2 = vector.broadcast %c-1_i32 : i32 to vector<16x128xi32>
    %3 = arith.addi %0, %2 : vector<16x128xi32>
    %c0_i32 = arith.constant 0 : i32
    %4 = vector.broadcast %c0_i32 : i32 to vector<16x128xi32>
    %5 = arith.cmpi sge, %3, %4 : vector<16x128xi32>
    %c-1_i32_0 = arith.constant -1 : i32
    %6 = vector.broadcast %c-1_i32_0 : i32 to vector<16x128xi32>
    %7 = arith.addi %0, %6 : vector<16x128xi32>
    %c16_i32 = arith.constant 16 : i32
    %8 = vector.broadcast %c16_i32 : i32 to vector<16x128xi32>
    %9 = arith.cmpi slt, %7, %8 : vector<16x128xi32>
    %10 = arith.andi %5, %9 : vector<16x128xi1>
    %c-8_i32 = arith.constant -8 : i32
    %11 = vector.broadcast %c-8_i32 : i32 to vector<16x128xi32>
    %12 = arith.addi %1, %11 : vector<16x128xi32>
    %c0_i32_1 = arith.constant 0 : i32
    %13 = vector.broadcast %c0_i32_1 : i32 to vector<16x128xi32>
    %14 = arith.cmpi sge, %12, %13 : vector<16x128xi32>
    %c-8_i32_2 = arith.constant -8 : i32
    %15 = vector.broadcast %c-8_i32_2 : i32 to vector<16x128xi32>
    %16 = arith.addi %1, %15 : vector<16x128xi32>
    %c128_i32 = arith.constant 128 : i32
    %17 = vector.broadcast %c128_i32 : i32 to vector<16x128xi32>
    %18 = arith.cmpi slt, %16, %17 : vector<16x128xi32>
    %19 = arith.andi %14, %18 : vector<16x128xi1>
    %c1_i32 = arith.constant 1 : i32
    %20 = vector.broadcast %c1_i32 : i32 to vector<16x128xi32>
    %21 = arith.addi %0, %20 : vector<16x128xi32>
    %c0_i32_3 = arith.constant 0 : i32
    %22 = vector.broadcast %c0_i32_3 : i32 to vector<16x128xi32>
    %23 = arith.cmpi sge, %21, %22 : vector<16x128xi32>
    %c1_i32_4 = arith.constant 1 : i32
    %24 = vector.broadcast %c1_i32_4 : i32 to vector<16x128xi32>
    %25 = arith.addi %0, %24 : vector<16x128xi32>
    %c16_i32_5 = arith.constant 16 : i32
    %26 = vector.broadcast %c16_i32_5 : i32 to vector<16x128xi32>
    %27 = arith.cmpi slt, %25, %26 : vector<16x128xi32>
    %28 = arith.andi %23, %27 : vector<16x128xi1>
    %c8_i32 = arith.constant 8 : i32
    %29 = vector.broadcast %c8_i32 : i32 to vector<16x128xi32>
    %30 = arith.addi %1, %29 : vector<16x128xi32>
    %c0_i32_6 = arith.constant 0 : i32
    %31 = vector.broadcast %c0_i32_6 : i32 to vector<16x128xi32>
    %32 = arith.cmpi sge, %30, %31 : vector<16x128xi32>
    %c8_i32_7 = arith.constant 8 : i32
    %33 = vector.broadcast %c8_i32_7 : i32 to vector<16x128xi32>
    %34 = arith.addi %1, %33 : vector<16x128xi32>
    %c128_i32_8 = arith.constant 128 : i32
    %35 = vector.broadcast %c128_i32_8 : i32 to vector<16x128xi32>
    %36 = arith.cmpi slt, %34, %35 : vector<16x128xi32>
    %37 = arith.andi %32, %36 : vector<16x128xi1>
    %c0 = arith.constant 0 : index
    %c0_9 = arith.constant 0 : index
    %c0_10 = arith.constant 0 : index
    %38 = vector.load %arg1[%c0, %c0_9, %c0_10] : memref<1x16x64xf32, #tpu.memory_space<vmem>>, vector<1x16x64xf32>
    %39 = vector.shape_cast %38 : vector<1x16x64xf32> to vector<16x64xf32>
    %c0_11 = arith.constant 0 : index
    %c0_12 = arith.constant 0 : index
    %40 = vector.load %arg2[%c0_11, %c0_12] : memref<64x128xf32, #tpu.memory_space<vmem>>, vector<64x128xf32>
    %cst = arith.constant dense<0.000000e+00> : vector<16x128xf32>
    %41 = tpu.matmul %39, %40, %cst {dimension_numbers = #tpu.dot_dimension_numbers<[1], [0], [0], [1], [0, 0, 1, 1], [], []>} : vector<16x64xf32>, vector<64x128xf32>, vector<16x128xf32> -> vector<16x128xf32>
    %c0_13 = arith.constant 0 : index
    %c0_14 = arith.constant 0 : index
    %42 = vector.load %arg3[%c0_13, %c0_14] : memref<1x128xf32, #tpu.memory_space<vmem>>, vector<1x128xf32>
    %43 = vector.broadcast %42 : vector<1x128xf32> to vector<16x128xf32>
    %44 = arith.addf %41, %43 : vector<16x128xf32>
    %c0_15 = arith.constant 0 : index
    %c0_16 = arith.constant 0 : index
    %45 = vector.load %arg5[%c0_15, %c0_16] : memref<1x128xf32, #tpu.memory_space<vmem>>, vector<1x128xf32>
    %46 = vector.extract_strided_slice %44 {offsets = [15, 0], sizes = [1, 128], strides = [1, 1]} : vector<16x128xf32> to vector<1x128xf32>
    %47 = vector.extract_strided_slice %44 {offsets = [0, 0], sizes = [15, 128], strides = [1, 1]} : vector<16x128xf32> to vector<15x128xf32>
    %48 = tpu.concatenate %46, %47 in 0 : vector<1x128xf32>, vector<15x128xf32> -> vector<16x128xf32>
    %49 = vector.extract_strided_slice %48 {offsets = [0, 120], sizes = [16, 8], strides = [1, 1]} : vector<16x128xf32> to vector<16x8xf32>
    %50 = vector.extract_strided_slice %48 {offsets = [0, 0], sizes = [16, 120], strides = [1, 1]} : vector<16x128xf32> to vector<16x120xf32>
    %51 = tpu.concatenate %49, %50 in 1 : vector<16x8xf32>, vector<16x120xf32> -> vector<16x128xf32>
    %52 = arith.andi %10, %19 : vector<16x128xi1>
    %cst_17 = arith.constant 0.000000e+00 : f32
    %53 = vector.broadcast %cst_17 : f32 to vector<16x128xf32>
    %54 = arith.select %52, %51, %53 : vector<16x128xi1>, vector<16x128xf32>
    %c0_18 = arith.constant 0 : index
    %c0_19 = arith.constant 0 : index
    %55 = vector.load %arg4[%c0_18, %c0_19] : memref<9x128xf32, #tpu.memory_space<vmem>>, vector<1x128xf32>
    %56 = vector.broadcast %55 : vector<1x128xf32> to vector<16x128xf32>
    %57 = arith.mulf %54, %56 : vector<16x128xf32>
    %58 = vector.broadcast %45 : vector<1x128xf32> to vector<16x128xf32>
    %59 = arith.addf %58, %57 : vector<16x128xf32>
    %cst_20 = arith.constant 0.000000e+00 : f32
    %60 = vector.broadcast %cst_20 : f32 to vector<16x128xf32>
    %61 = arith.select %10, %48, %60 : vector<16x128xi1>, vector<16x128xf32>
    %c1 = arith.constant 1 : index
    %c0_21 = arith.constant 0 : index
    %62 = vector.load %arg4[%c1, %c0_21] : memref<9x128xf32, #tpu.memory_space<vmem>>, vector<1x128xf32>
    %63 = vector.broadcast %62 : vector<1x128xf32> to vector<16x128xf32>
    %64 = arith.mulf %61, %63 : vector<16x128xf32>
    %65 = arith.addf %59, %64 : vector<16x128xf32>
    %66 = vector.extract_strided_slice %48 {offsets = [0, 8], sizes = [16, 120], strides = [1, 1]} : vector<16x128xf32> to vector<16x120xf32>
    %67 = vector.extract_strided_slice %48 {offsets = [0, 0], sizes = [16, 8], strides = [1, 1]} : vector<16x128xf32> to vector<16x8xf32>
    %68 = tpu.concatenate %66, %67 in 1 : vector<16x120xf32>, vector<16x8xf32> -> vector<16x128xf32>
    %69 = arith.andi %10, %37 : vector<16x128xi1>
    %cst_22 = arith.constant 0.000000e+00 : f32
    %70 = vector.broadcast %cst_22 : f32 to vector<16x128xf32>
    %71 = arith.select %69, %68, %70 : vector<16x128xi1>, vector<16x128xf32>
    %c2 = arith.constant 2 : index
    %c0_23 = arith.constant 0 : index
    %72 = vector.load %arg4[%c2, %c0_23] : memref<9x128xf32, #tpu.memory_space<vmem>>, vector<1x128xf32>
    %73 = vector.broadcast %72 : vector<1x128xf32> to vector<16x128xf32>
    %74 = arith.mulf %71, %73 : vector<16x128xf32>
    %75 = arith.addf %65, %74 : vector<16x128xf32>
    %76 = vector.extract_strided_slice %44 {offsets = [0, 120], sizes = [16, 8], strides = [1, 1]} : vector<16x128xf32> to vector<16x8xf32>
    %77 = vector.extract_strided_slice %44 {offsets = [0, 0], sizes = [16, 120], strides = [1, 1]} : vector<16x128xf32> to vector<16x120xf32>
    %78 = tpu.concatenate %76, %77 in 1 : vector<16x8xf32>, vector<16x120xf32> -> vector<16x128xf32>
    %cst_24 = arith.constant 0.000000e+00 : f32
    %79 = vector.broadcast %cst_24 : f32 to vector<16x128xf32>
    %80 = arith.select %19, %78, %79 : vector<16x128xi1>, vector<16x128xf32>
    %c3 = arith.constant 3 : index
    %c0_25 = arith.constant 0 : index
    %81 = vector.load %arg4[%c3, %c0_25] : memref<9x128xf32, #tpu.memory_space<vmem>>, vector<1x128xf32>
    %82 = vector.broadcast %81 : vector<1x128xf32> to vector<16x128xf32>
    %83 = arith.mulf %80, %82 : vector<16x128xf32>
    %84 = arith.addf %75, %83 : vector<16x128xf32>
    %c4 = arith.constant 4 : index
    %c0_26 = arith.constant 0 : index
    %85 = vector.load %arg4[%c4, %c0_26] : memref<9x128xf32, #tpu.memory_space<vmem>>, vector<1x128xf32>
    %86 = vector.broadcast %85 : vector<1x128xf32> to vector<16x128xf32>
    %87 = arith.mulf %44, %86 : vector<16x128xf32>
    %88 = arith.addf %84, %87 : vector<16x128xf32>
    %89 = vector.extract_strided_slice %44 {offsets = [0, 8], sizes = [16, 120], strides = [1, 1]} : vector<16x128xf32> to vector<16x120xf32>
    %90 = vector.extract_strided_slice %44 {offsets = [0, 0], sizes = [16, 8], strides = [1, 1]} : vector<16x128xf32> to vector<16x8xf32>
    %91 = tpu.concatenate %89, %90 in 1 : vector<16x120xf32>, vector<16x8xf32> -> vector<16x128xf32>
    %cst_27 = arith.constant 0.000000e+00 : f32
    %92 = vector.broadcast %cst_27 : f32 to vector<16x128xf32>
    %93 = arith.select %37, %91, %92 : vector<16x128xi1>, vector<16x128xf32>
    %c5 = arith.constant 5 : index
    %c0_28 = arith.constant 0 : index
    %94 = vector.load %arg4[%c5, %c0_28] : memref<9x128xf32, #tpu.memory_space<vmem>>, vector<1x128xf32>
    %95 = vector.broadcast %94 : vector<1x128xf32> to vector<16x128xf32>
    %96 = arith.mulf %93, %95 : vector<16x128xf32>
    %97 = arith.addf %88, %96 : vector<16x128xf32>
    %98 = vector.extract_strided_slice %44 {offsets = [1, 0], sizes = [15, 128], strides = [1, 1]} : vector<16x128xf32> to vector<15x128xf32>
    %99 = vector.extract_strided_slice %44 {offsets = [0, 0], sizes = [1, 128], strides = [1, 1]} : vector<16x128xf32> to vector<1x128xf32>
    %100 = tpu.concatenate %98, %99 in 0 : vector<15x128xf32>, vector<1x128xf32> -> vector<16x128xf32>
    %101 = vector.extract_strided_slice %100 {offsets = [0, 120], sizes = [16, 8], strides = [1, 1]} : vector<16x128xf32> to vector<16x8xf32>
    %102 = vector.extract_strided_slice %100 {offsets = [0, 0], sizes = [16, 120], strides = [1, 1]} : vector<16x128xf32> to vector<16x120xf32>
    %103 = tpu.concatenate %101, %102 in 1 : vector<16x8xf32>, vector<16x120xf32> -> vector<16x128xf32>
    %104 = arith.andi %28, %19 : vector<16x128xi1>
    %cst_29 = arith.constant 0.000000e+00 : f32
    %105 = vector.broadcast %cst_29 : f32 to vector<16x128xf32>
    %106 = arith.select %104, %103, %105 : vector<16x128xi1>, vector<16x128xf32>
    %c6 = arith.constant 6 : index
    %c0_30 = arith.constant 0 : index
    %107 = vector.load %arg4[%c6, %c0_30] : memref<9x128xf32, #tpu.memory_space<vmem>>, vector<1x128xf32>
    %108 = vector.broadcast %107 : vector<1x128xf32> to vector<16x128xf32>
    %109 = arith.mulf %106, %108 : vector<16x128xf32>
    %110 = arith.addf %97, %109 : vector<16x128xf32>
    %cst_31 = arith.constant 0.000000e+00 : f32
    %111 = vector.broadcast %cst_31 : f32 to vector<16x128xf32>
    %112 = arith.select %28, %100, %111 : vector<16x128xi1>, vector<16x128xf32>
    %c7 = arith.constant 7 : index
    %c0_32 = arith.constant 0 : index
    %113 = vector.load %arg4[%c7, %c0_32] : memref<9x128xf32, #tpu.memory_space<vmem>>, vector<1x128xf32>
    %114 = vector.broadcast %113 : vector<1x128xf32> to vector<16x128xf32>
    %115 = arith.mulf %112, %114 : vector<16x128xf32>
    %116 = arith.addf %110, %115 : vector<16x128xf32>
    %117 = vector.extract_strided_slice %100 {offsets = [0, 8], sizes = [16, 120], strides = [1, 1]} : vector<16x128xf32> to vector<16x120xf32>
    %118 = vector.extract_strided_slice %100 {offsets = [0, 0], sizes = [16, 8], strides = [1, 1]} : vector<16x128xf32> to vector<16x8xf32>
    %119 = tpu.concatenate %117, %118 in 1 : vector<16x120xf32>, vector<16x8xf32> -> vector<16x128xf32>
    %120 = arith.andi %28, %37 : vector<16x128xi1>
    %cst_33 = arith.constant 0.000000e+00 : f32
    %121 = vector.broadcast %cst_33 : f32 to vector<16x128xf32>
    %122 = arith.select %120, %119, %121 : vector<16x128xi1>, vector<16x128xf32>
    %c8 = arith.constant 8 : index
    %c0_34 = arith.constant 0 : index
    %123 = vector.load %arg4[%c8, %c0_34] : memref<9x128xf32, #tpu.memory_space<vmem>>, vector<1x128xf32>
    %124 = vector.broadcast %123 : vector<1x128xf32> to vector<16x128xf32>
    %125 = arith.mulf %122, %124 : vector<16x128xf32>
    %126 = arith.addf %116, %125 : vector<16x128xf32>
    %cst_35 = arith.constant 0.000000e+00 : f32
    %127 = vector.broadcast %cst_35 : f32 to vector<16x128xf32>
    %128 = vector.extract_strided_slice %126 {offsets = [15, 0], sizes = [1, 128], strides = [1, 1]} : vector<16x128xf32> to vector<1x128xf32>
    %129 = vector.extract_strided_slice %126 {offsets = [0, 0], sizes = [15, 128], strides = [1, 1]} : vector<16x128xf32> to vector<15x128xf32>
    %130 = tpu.concatenate %128, %129 in 0 : vector<1x128xf32>, vector<15x128xf32> -> vector<16x128xf32>
    %131 = vector.extract_strided_slice %130 {offsets = [0, 120], sizes = [16, 8], strides = [1, 1]} : vector<16x128xf32> to vector<16x8xf32>
    %132 = vector.extract_strided_slice %130 {offsets = [0, 0], sizes = [16, 120], strides = [1, 1]} : vector<16x128xf32> to vector<16x120xf32>
    %133 = tpu.concatenate %131, %132 in 1 : vector<16x8xf32>, vector<16x120xf32> -> vector<16x128xf32>
    %134 = arith.andi %10, %19 : vector<16x128xi1>
    %cst_36 = arith.constant 0.000000e+00 : f32
    %135 = vector.broadcast %cst_36 : f32 to vector<16x128xf32>
    %136 = arith.select %134, %133, %135 : vector<16x128xi1>, vector<16x128xf32>
    %c0_37 = arith.constant 0 : index
    %c0_38 = arith.constant 0 : index
    %137 = vector.load %arg6[%c0_37, %c0_38] : memref<9x128xf32, #tpu.memory_space<vmem>>, vector<1x128xf32>
    %138 = vector.broadcast %137 : vector<1x128xf32> to vector<16x128xf32>
    %139 = arith.mulf %136, %138 : vector<16x128xf32>
    %140 = arith.addf %127, %139 : vector<16x128xf32>
    %cst_39 = arith.constant 0.000000e+00 : f32
    %141 = vector.broadcast %cst_39 : f32 to vector<16x128xf32>
    %142 = arith.select %10, %130, %141 : vector<16x128xi1>, vector<16x128xf32>
    %c1_40 = arith.constant 1 : index
    %c0_41 = arith.constant 0 : index
    %143 = vector.load %arg6[%c1_40, %c0_41] : memref<9x128xf32, #tpu.memory_space<vmem>>, vector<1x128xf32>
    %144 = vector.broadcast %143 : vector<1x128xf32> to vector<16x128xf32>
    %145 = arith.mulf %142, %144 : vector<16x128xf32>
    %146 = arith.addf %140, %145 : vector<16x128xf32>
    %147 = vector.extract_strided_slice %130 {offsets = [0, 8], sizes = [16, 120], strides = [1, 1]} : vector<16x128xf32> to vector<16x120xf32>
    %148 = vector.extract_strided_slice %130 {offsets = [0, 0], sizes = [16, 8], strides = [1, 1]} : vector<16x128xf32> to vector<16x8xf32>
    %149 = tpu.concatenate %147, %148 in 1 : vector<16x120xf32>, vector<16x8xf32> -> vector<16x128xf32>
    %150 = arith.andi %10, %37 : vector<16x128xi1>
    %cst_42 = arith.constant 0.000000e+00 : f32
    %151 = vector.broadcast %cst_42 : f32 to vector<16x128xf32>
    %152 = arith.select %150, %149, %151 : vector<16x128xi1>, vector<16x128xf32>
    %c2_43 = arith.constant 2 : index
    %c0_44 = arith.constant 0 : index
    %153 = vector.load %arg6[%c2_43, %c0_44] : memref<9x128xf32, #tpu.memory_space<vmem>>, vector<1x128xf32>
    %154 = vector.broadcast %153 : vector<1x128xf32> to vector<16x128xf32>
    %155 = arith.mulf %152, %154 : vector<16x128xf32>
    %156 = arith.addf %146, %155 : vector<16x128xf32>
    %157 = vector.extract_strided_slice %126 {offsets = [0, 120], sizes = [16, 8], strides = [1, 1]} : vector<16x128xf32> to vector<16x8xf32>
    %158 = vector.extract_strided_slice %126 {offsets = [0, 0], sizes = [16, 120], strides = [1, 1]} : vector<16x128xf32> to vector<16x120xf32>
    %159 = tpu.concatenate %157, %158 in 1 : vector<16x8xf32>, vector<16x120xf32> -> vector<16x128xf32>
    %cst_45 = arith.constant 0.000000e+00 : f32
    %160 = vector.broadcast %cst_45 : f32 to vector<16x128xf32>
    %161 = arith.select %19, %159, %160 : vector<16x128xi1>, vector<16x128xf32>
    %c3_46 = arith.constant 3 : index
    %c0_47 = arith.constant 0 : index
    %162 = vector.load %arg6[%c3_46, %c0_47] : memref<9x128xf32, #tpu.memory_space<vmem>>, vector<1x128xf32>
    %163 = vector.broadcast %162 : vector<1x128xf32> to vector<16x128xf32>
    %164 = arith.mulf %161, %163 : vector<16x128xf32>
    %165 = arith.addf %156, %164 : vector<16x128xf32>
    %c4_48 = arith.constant 4 : index
    %c0_49 = arith.constant 0 : index
    %166 = vector.load %arg6[%c4_48, %c0_49] : memref<9x128xf32, #tpu.memory_space<vmem>>, vector<1x128xf32>
    %167 = vector.broadcast %166 : vector<1x128xf32> to vector<16x128xf32>
    %168 = arith.mulf %126, %167 : vector<16x128xf32>
    %169 = arith.addf %165, %168 : vector<16x128xf32>
    %170 = vector.extract_strided_slice %126 {offsets = [0, 8], sizes = [16, 120], strides = [1, 1]} : vector<16x128xf32> to vector<16x120xf32>
    %171 = vector.extract_strided_slice %126 {offsets = [0, 0], sizes = [16, 8], strides = [1, 1]} : vector<16x128xf32> to vector<16x8xf32>
    %172 = tpu.concatenate %170, %171 in 1 : vector<16x120xf32>, vector<16x8xf32> -> vector<16x128xf32>
    %cst_50 = arith.constant 0.000000e+00 : f32
    %173 = vector.broadcast %cst_50 : f32 to vector<16x128xf32>
    %174 = arith.select %37, %172, %173 : vector<16x128xi1>, vector<16x128xf32>
    %c5_51 = arith.constant 5 : index
    %c0_52 = arith.constant 0 : index
    %175 = vector.load %arg6[%c5_51, %c0_52] : memref<9x128xf32, #tpu.memory_space<vmem>>, vector<1x128xf32>
    %176 = vector.broadcast %175 : vector<1x128xf32> to vector<16x128xf32>
    %177 = arith.mulf %174, %176 : vector<16x128xf32>
    %178 = arith.addf %169, %177 : vector<16x128xf32>
    %179 = vector.extract_strided_slice %126 {offsets = [1, 0], sizes = [15, 128], strides = [1, 1]} : vector<16x128xf32> to vector<15x128xf32>
    %180 = vector.extract_strided_slice %126 {offsets = [0, 0], sizes = [1, 128], strides = [1, 1]} : vector<16x128xf32> to vector<1x128xf32>
    %181 = tpu.concatenate %179, %180 in 0 : vector<15x128xf32>, vector<1x128xf32> -> vector<16x128xf32>
    %182 = vector.extract_strided_slice %181 {offsets = [0, 120], sizes = [16, 8], strides = [1, 1]} : vector<16x128xf32> to vector<16x8xf32>
    %183 = vector.extract_strided_slice %181 {offsets = [0, 0], sizes = [16, 120], strides = [1, 1]} : vector<16x128xf32> to vector<16x120xf32>
    %184 = tpu.concatenate %182, %183 in 1 : vector<16x8xf32>, vector<16x120xf32> -> vector<16x128xf32>
    %185 = arith.andi %28, %19 : vector<16x128xi1>
    %cst_53 = arith.constant 0.000000e+00 : f32
    %186 = vector.broadcast %cst_53 : f32 to vector<16x128xf32>
    %187 = arith.select %185, %184, %186 : vector<16x128xi1>, vector<16x128xf32>
    %c6_54 = arith.constant 6 : index
    %c0_55 = arith.constant 0 : index
    %188 = vector.load %arg6[%c6_54, %c0_55] : memref<9x128xf32, #tpu.memory_space<vmem>>, vector<1x128xf32>
    %189 = vector.broadcast %188 : vector<1x128xf32> to vector<16x128xf32>
    %190 = arith.mulf %187, %189 : vector<16x128xf32>
    %191 = arith.addf %178, %190 : vector<16x128xf32>
    %cst_56 = arith.constant 0.000000e+00 : f32
    %192 = vector.broadcast %cst_56 : f32 to vector<16x128xf32>
    %193 = arith.select %28, %181, %192 : vector<16x128xi1>, vector<16x128xf32>
    %c7_57 = arith.constant 7 : index
    %c0_58 = arith.constant 0 : index
    %194 = vector.load %arg6[%c7_57, %c0_58] : memref<9x128xf32, #tpu.memory_space<vmem>>, vector<1x128xf32>
    %195 = vector.broadcast %194 : vector<1x128xf32> to vector<16x128xf32>
    %196 = arith.mulf %193, %195 : vector<16x128xf32>
    %197 = arith.addf %191, %196 : vector<16x128xf32>
    %198 = vector.extract_strided_slice %181 {offsets = [0, 8], sizes = [16, 120], strides = [1, 1]} : vector<16x128xf32> to vector<16x120xf32>
    %199 = vector.extract_strided_slice %181 {offsets = [0, 0], sizes = [16, 8], strides = [1, 1]} : vector<16x128xf32> to vector<16x8xf32>
    %200 = tpu.concatenate %198, %199 in 1 : vector<16x120xf32>, vector<16x8xf32> -> vector<16x128xf32>
    %201 = arith.andi %28, %37 : vector<16x128xi1>
    %cst_59 = arith.constant 0.000000e+00 : f32
    %202 = vector.broadcast %cst_59 : f32 to vector<16x128xf32>
    %203 = arith.select %201, %200, %202 : vector<16x128xi1>, vector<16x128xf32>
    %c8_60 = arith.constant 8 : index
    %c0_61 = arith.constant 0 : index
    %204 = vector.load %arg6[%c8_60, %c0_61] : memref<9x128xf32, #tpu.memory_space<vmem>>, vector<1x128xf32>
    %205 = vector.broadcast %204 : vector<1x128xf32> to vector<16x128xf32>
    %206 = arith.mulf %203, %205 : vector<16x128xf32>
    %207 = arith.addf %197, %206 : vector<16x128xf32>
    %c0_62 = arith.constant 0 : index
    %c0_63 = arith.constant 0 : index
    %208 = vector.load %arg7[%c0_62, %c0_63] : memref<128x128xf32, #tpu.memory_space<vmem>>, vector<128x128xf32>
    %cst_64 = arith.constant dense<0.000000e+00> : vector<16x128xf32>
    %209 = tpu.matmul %207, %208, %cst_64 {dimension_numbers = #tpu.dot_dimension_numbers<[1], [0], [0], [1], [0, 0, 1, 1], [], []>} : vector<16x128xf32>, vector<128x128xf32>, vector<16x128xf32> -> vector<16x128xf32>
    %210 = arith.addf %126, %209 : vector<16x128xf32>
    %c0_65 = arith.constant 0 : index
    %c0_66 = arith.constant 0 : index
    %c0_67 = arith.constant 0 : index
    %211 = vector.load %arg8[%c0_65, %c0_66, %c0_67] : memref<1x16x128xf32, #tpu.memory_space<vmem>>, vector<1x16x128xf32>
    %212 = vector.shape_cast %211 : vector<1x16x128xf32> to vector<16x128xf32>
    %213 = vector.shape_cast %210 : vector<16x128xf32> to vector<1x16x128xf32>
    tpu.vector_store %arg8[%c0_65, %c0_66, %c0_67], %213 {strides = array<i32>} : memref<1x16x128xf32, #tpu.memory_space<vmem>>, vector<1x16x128xf32>,
    return
  }
  func.func @transform_0(%arg0: i32) -> (i32, i32, i32) {
    %c0_i32 = arith.constant 0 : i32
    %c0_i32_0 = arith.constant 0 : i32
    %c0_i32_1 = arith.constant 0 : i32
    return %arg0, %c0_i32, %c0_i32_0 : i32, i32, i32
  }
  func.func @transform_1(%arg0: i32) -> (i32, i32) {
    %c0_i32 = arith.constant 0 : i32
    %c0_i32_0 = arith.constant 0 : i32
    %c0_i32_1 = arith.constant 0 : i32
    return %c0_i32, %c0_i32_0 : i32, i32
  }
  func.func @transform_2(%arg0: i32) -> (i32, i32) {
    %c0_i32 = arith.constant 0 : i32
    %c0_i32_0 = arith.constant 0 : i32
    %c0_i32_1 = arith.constant 0 : i32
    return %c0_i32, %c0_i32_0 : i32, i32
  }
  func.func @transform_3(%arg0: i32) -> (i32, i32) {
    %c0_i32 = arith.constant 0 : i32
    %c0_i32_0 = arith.constant 0 : i32
    %c0_i32_1 = arith.constant 0 : i32
    return %c0_i32, %c0_i32_0 : i32, i32
  }
  func.func @transform_4(%arg0: i32) -> (i32, i32) {
    %c0_i32 = arith.constant 0 : i32
    %c0_i32_0 = arith.constant 0 : i32
    %c0_i32_1 = arith.constant 0 : i32
    return %c0_i32, %c0_i32_0 : i32, i32
  }
  func.func @transform_5(%arg0: i32) -> (i32, i32) {
    %c0_i32 = arith.constant 0 : i32
    %c0_i32_0 = arith.constant 0 : i32
    %c0_i32_1 = arith.constant 0 : i32
    return %c0_i32, %c0_i32_0 : i32, i32
  }
  func.func @transform_6(%arg0: i32) -> (i32, i32) {
    %c0_i32 = arith.constant 0 : i32
    %c0_i32_0 = arith.constant 0 : i32
    %c0_i32_1 = arith.constant 0 : i32
    return %c0_i32, %c0_i32_0 : i32, i32
  }
  func.func @transform_7(%arg0: i32) -> (i32, i32, i32) {
    %c0_i32 = arith.constant 0 : i32
    %c0_i32_0 = arith.constant 0 : i32
    %c0_i32_1 = arith.constant 0 : i32
    return %arg0, %c0_i32, %c0_i32_0 : i32, i32, i32
  }
}

</mosaic_0001>

<bundles_post_ra>
// kernel: tpu_custom_call.1
= control target key start
LH: loop header
LB: loop body
LE: loop exit
PB: predicated region body
PF: predicated region fallthrough
CT: control target
= control target key end

     0   :  { %12 = vsyncpa [#allocation3], 0  ;;  %s1983_s0 = inlined_call_operand.hbm [shape: f32[2,16,64], index: 0, kind: input, shape index: {}]   ;;  %s1984_s1 = inlined_call_operand.hbm [shape: f32[64,128], index: 1, kind: input, shape index: {}]   ;;  %s1985_s2 = inlined_call_operand.vmem [shape: f32[1,128], index: 2, kind: input, shape index: {}]   ;;  %s1986_s3 = inlined_call_operand.hbm [shape: f32[9,128], index: 3, kind: input, shape index: {}]   ;;  %s1987_s4 = inlined_call_operand.vmem [shape: f32[1,128], index: 4, kind: input, shape index: {}]   ;;  %s1988_s5 = inlined_call_operand.vmem [shape: f32[9,128], index: 5, kind: input, shape index: {}]   ;;  %s1989_s6 = inlined_call_operand.hbm [shape: f32[128,128], index: 6, kind: input, shape index: {}]   ;;  %s1990_s7 = inlined_call_operand.hbm [shape: f32[2,16,128], index: 7, kind: output, shape index: {}]  }
   0x1   :  { %14 = vsyncpa [#allocation3 + $0x1], 0 }
   0x2   :  { %15 = vsyncpa [#allocation6], 0 }
   0x3   :  { %16 = vsyncpa [#allocation9], 0 }
   0x4   :  { %17 = vsyncpa [#allocation4], 0 }
   0x5   :  { %19 = vsyncpa [#allocation4 + $0x1], 0  ;;  %s1495_s24 = smov 0   ;;  %s1497_s25 = smov 0  }
   0x6   :  { %s1499_s26 = smov 0   ;;  %s1501_s27 = smov 0  }
   0x7 LB: > { %s1516_s28 = sadd.s32 4294967295, %s1443_s27   ;;  %s999_s29 = sadd.s32 4294967294, %s1443_s27   ;;  %s1443_s27 = sphi %s1501_s27, %s2024_s27   ;;  %s1439_s26 = sphi %s1499_s26, %s2023_s26   ;;  %s1435_s25 = sphi %s1497_s25, %s2022_s25   ;;  %s1431_s24 = sphi %s1495_s24, %s2021_s24  }
   0x8   : > { %p45_p0 = scmp.ne.s32.totalorder %s1435_s25, %s1431_s24  ;;  %p1991_p1 = scmp.eq.s32.totalorder %s1516_s28, 0 }
   0x9   : > { %p201_p3 = scmp.eq.s32.totalorder %s999_s29, 1  ;;  %p1000_p5 = scmp.ge.s32.totalorder %s1443_s27, 1 }
   0xa   : > { %p1525_p4 = por %p1991_p1, %p45_p0  ;;  %p208_p7 = scmp.lt.s32.totalorder %s1443_s27, 3 }
   0xb   : > { %p1530_p6 = por %p201_p3, %p45_p0  ;;  %s1445_s10 = smov [#allocation5]  }
   0xc   : > { %s1995_s30 = scalar_select %p1525_p4, 1, 0 }
   0xd   : > { %s1996_s8 = scalar_select %p1530_p6, 1, 0 }
   0xe   : > { %p1535_p8 = pnand %p1000_p5, %p208_p7  ;;  %s220_s11 = sshll.u32 %s1445_s10, 4  ;;  %s1539_s11 = int_to_ptr.vmem [resolvable:$true] %s220_s11 }
   0xf   : > { %1997 = sst [smem:[#allocation15_spill]] %s1996_s8  ;;  %s1446_s13 = smov [#allocation7]  }
  0x10   : > { %s1998_s9 = scalar_select %p1535_p8, 1, 0 }
  0x11   : > { %p1189_p9 = pneg %p1535_p8  ;;  %s236_s14 = sshll.u32 %s1446_s13, 4  ;;  %s1550_s14 = int_to_ptr.vmem [resolvable:$true] %s236_s14 }
  0x12   : > { %s1447_s15 = smov [#allocation8]   ;;  %s1255_s19 = scalar_lea.hbm %s1984_s1, 1024 }
  0x13   : > { %p1546_p11 = pnand %p1189_p9, %p1991_p1  ;;  %s1552_s16 = sshll.u32 %s1447_s15, 4  ;;  %s256_s16 = int_to_ptr.vmem [resolvable:$true] %s1552_s16 }
  0x14   : > { %p1256_p12 = scmp.ne.s32.totalorder %s1984_s1, %s1255_s19  ;;  %p1262_p5 = scmp.lt.u32.totalorder %s1255_s19, %s1984_s1 }
  0x15   : > { %p1562_p13 = pneg %p1546_p11 }
  0x17   : > { %p1258_p0 = pnand %p1562_p13, %p1256_p12 }
  0x19   : > { %p1259_p3 = pneg %p1258_p0 }
  0x1b   : > { %p1264_p7 = pnand %p1262_p5, %p1259_p3 }
  0x1d   : > { %1267 = shalt.err (!%p1264_p7)
}
  0x1e   : > { %s1268_s10 = scalar_lea.vmem %s1539_s11, 1024  ;;  %p1276_p2 = scmp.lt.s32.totalorder %s1539_s11, %s1539_s11 }
  0x1f   : > { %p1269_p9 = scmp.ne.s32.totalorder %s1539_s11, %s1268_s10  ;;  %p1277_p6 = scmp.lt.s32.totalorder %s1268_s10, %s1268_s10 }
  0x21   : > { %p1271_p10 = pnand %p1269_p9, %p1562_p13  ;;  %p1278_p12 = por %p1277_p6, %p1276_p2 }
  0x23   : > { %p1272_p1 = pneg %p1271_p10 }
  0x25   : > { %p1279_p0 = pnand %p1278_p12, %p1272_p1 }
  0x27   : > { %1282 = shalt.err (!%p1279_p0)
}
  0x28   : > { %s1448_s13 = smov 128   ;;  %s1449_s15 = smov 8  }
  0x29   : > { %1192 = dma.hbm_to_vmem [thread:$0]  (!%p1546_p11), %s1984_s1, 1024, %s1539_s11, [#allocation6], %s1448_s13, %s1448_s13, %s1449_s15  }
  0x2a   : > { %s1283_s21 = scalar_lea.hbm %s1986_s3, 256 }
  0x2b   : > { %p1284_p1 = scmp.ne.s32.totalorder %s1986_s3, %s1283_s21  ;;  %p1290_p10 = scmp.lt.u32.totalorder %s1283_s21, %s1986_s3 }
  0x2d   : > { %p1286_p2 = pnand %p1284_p1, %p1562_p13 }
  0x2f   : > { %p1287_p6 = pneg %p1286_p2 }
  0x31   : > { %p1292_p3 = pnand %p1290_p10, %p1287_p6 }
  0x33   : > { %1295 = shalt.err (!%p1292_p3)
}
  0x34   : > { %s1296_s11 = scalar_lea.vmem %s1550_s14, 256  ;;  %p1304_p12 = scmp.lt.s32.totalorder %s1550_s14, %s1550_s14 }
  0x35   : > { %p1297_p5 = scmp.ne.s32.totalorder %s1550_s14, %s1296_s11  ;;  %p1305_p0 = scmp.lt.s32.totalorder %s1296_s11, %s1296_s11 }
  0x37   : > { %p1299_p7 = pnand %p1297_p5, %p1562_p13  ;;  %p1306_p1 = por %p1305_p0, %p1304_p12 }
  0x39   : > { %p1300_p9 = pneg %p1299_p7 }
  0x3b   : > { %p1307_p2 = pnand %p1306_p1, %p1300_p9 }
  0x3d   : > { %1310 = shalt.err (!%p1307_p2)
}
  0x3e   : > { %1195 = dma.hbm_to_vmem [thread:$0]  (!%p1546_p11), %s1986_s3, 256, %s1550_s14, [#allocation6], %s1448_s13, %s1448_s13, %s1449_s15  }
  0x3f   : > { %s1311_s20 = scalar_lea.hbm %s1989_s6, 2048 }
  0x40   : > { %p1312_p6 = scmp.ne.s32.totalorder %s1989_s6, %s1311_s20  ;;  %p1318_p5 = scmp.lt.u32.totalorder %s1311_s20, %s1989_s6 }
  0x42   : > { %p1314_p10 = pnand %p1312_p6, %p1562_p13 }
  0x44   : > { %p1315_p3 = pneg %p1314_p10 }
  0x46   : > { %p1320_p7 = pnand %p1318_p5, %p1315_p3 }
  0x48   : > { %1323 = shalt.err (!%p1320_p7)
}
  0x49   : > { %s1324_s11 = scalar_lea.vmem %s256_s16, 2048  ;;  %p1332_p1 = scmp.lt.s32.totalorder %s256_s16, %s256_s16 }
  0x4a   : > { %p1325_p9 = scmp.ne.s32.totalorder %s256_s16, %s1324_s11  ;;  %p1333_p2 = scmp.lt.s32.totalorder %s1324_s11, %s1324_s11 }
  0x4c   : > { %p1327_p12 = pnand %p1325_p9, %p1562_p13  ;;  %p1334_p4 = por %p1333_p2, %p1332_p1 }
  0x4e   : > { %p1328_p0 = pneg %p1327_p12 }
  0x50   : > { %p1335_p8 = pnand %p1334_p4, %p1328_p0 }
  0x52   : > { %1338 = shalt.err (!%p1335_p8)
}
  0x53   : > { %1198 = dma.hbm_to_vmem [thread:$0]  (!%p1546_p11), %s1989_s6, 2048, %s256_s16, [#allocation9], %s1448_s13, %s1448_s13, %s1449_s15  }
  0x54   : > { %s1635_s22 = sadd.s32 1, %s1443_s27   ;;  %s32_s17 = sadd.s32 1, %s1439_s26 }
  0x55   : > { %s29_s12 = ssub.s32 %s1443_s27, %s1635_s22  ;;  %p39_p8 = scmp.ne.s32.totalorder %s1439_s26, %s1435_s25 }
  0x56   : > { %p30_p4 = scmp.eq.s32.totalorder %s29_s12, 0  ;;  %p40_p13 = scmp.eq.s32.totalorder %s1443_s27, 0 }
  0x57   : > { %p1210_p6 = scmp.lt.s32.totalorder %s1443_s27, 2  ;;  %p2001_p3 = scmp.eq.s32.totalorder %s1516_s28, 1 }
  0x58   : > { %s1645_s18 = scalar_select %p30_p4, %s1439_s26, %s32_s17  }
  0x59   : > { %p41_p10 = por %p40_p13, %p39_p8  ;;  %p1649_p5 = por %p2001_p3, %p39_p8 }
  0x5a   : > { %s269_s20 = sand.u32 1, %s1439_s26   ;;  %s1041_s21 = sshll.u32 %s1443_s27, 8 }
  0x5b   : > { %s1005_s16 = sshll.u32 %s269_s20, 4  ;;  %s1658_s10 = scalar_lea.hbm %s1983_s0, %s1041_s21 }
  0x5c   : > { %s273_s11 = scalar_lea.vmem [#allocation2], %s1005_s16  ;;  %p1660_p11 = pnand %p1210_p6, %p41_p10 }
  0x5d   : > { %s280_s14 = sshll.u32 %s273_s11, 4  ;;  %s1666_s12 = scalar_lea.sflag [#allocation3], %s269_s20  ;;  %s1664_s14 = int_to_ptr.vmem [resolvable:$true] %s280_s14 }
  0x5e   : > { %s1339_s17 = scalar_lea.hbm %s1658_s10, 256  ;;  %p1341_p9 = pneg %p1660_p11 }
  0x5f   : > { %p1340_p7 = scmp.ne.s32.totalorder %s1658_s10, %s1339_s17  ;;  %s1344_s23 = scalar_lea.hbm %s1983_s0, 512 }
  0x60   : > { %p1345_p1 = scmp.lt.u32.totalorder %s1658_s10, %s1983_s0  ;;  %p1346_p2 = scmp.lt.u32.totalorder %s1344_s23, %s1339_s17 }
  0x61   : > { %p1342_p12 = pnand %p1341_p9, %p1340_p7  ;;  %p1348_p8 = scmp.lt.u32.totalorder %s1339_s17, %s1658_s10 }
  0x62   : > { %p1347_p4 = por %p1346_p2, %p1345_p1 }
  0x63   : > { %p1343_p0 = pneg %p1342_p12 }
  0x64   : > { %p1349_p13 = por %p1348_p8, %p1347_p4 }
  0x66   : > { %p1350_p6 = pnand %p1349_p13, %p1343_p0 }
  0x68   : > { %1353 = shalt.err (!%p1350_p6)
}
  0x69   : > { %s1354_s20 = scalar_lea.vmem %s1664_s14, 256  ;;  %s1450_s21 = smov [#allocation2]  }
  0x6a   : > { %p1355_p10 = scmp.ne.s32.totalorder %s1664_s14, %s1354_s20  ;;  %s1359_s16 = sshll.u32 %s1450_s21, 4  ;;  %s1360_s16 = int_to_ptr.vmem [resolvable:$false] %s1359_s16 }
  0x6b   : > { %s1361_s29 = scalar_lea.vmem %s1360_s16, 512  ;;  %p1362_p12 = scmp.lt.s32.totalorder %s1664_s14, %s1360_s16 }
  0x6c   : > { %p1357_p3 = pnand %p1355_p10, %p1341_p9  ;;  %p1363_p1 = scmp.lt.s32.totalorder %s1361_s29, %s1354_s20 }
  0x6e   : > { %p1358_p7 = pneg %p1357_p3  ;;  %p1364_p2 = por %p1363_p1, %p1362_p12 }
  0x70   : > { %p1365_p4 = pnand %p1364_p2, %p1358_p7 }
  0x72   : > { %1368 = shalt.err (!%p1365_p4)
}
  0x73   : > { %1202 = dma.hbm_to_vmem [thread:$0]  (!%p1660_p11), %s1658_s10, 256, %s1664_s14, %s1666_s12, %s1448_s13, %s1448_s13, %s1449_s15  }
  0x74   : > { %p2004_p9 = scmp.ne.s32.totalorder %s1998_s9, 0 }
  0x75   : > { %s1700_s17 = sand.u32 (!%p2004_p9), 1, %s1435_s25   ;;  %p2005_p0 = scmp.ne.s32.totalorder (!%p2004_p9), %s1995_s30, 0 }
  0x76   : > { %292 = sbr.rel (%p2004_p9) target bundleno = 881 (0x371), region = 48  ;;  %s1009_s23 = sshll.u32 (!%p2004_p9), %s1700_s17, 4 }
  0x77   : > { %s295_s11 = scalar_lea.sflag (!%p2004_p9), [#allocation3], %s1700_s17  ;;  %s298_s8 = scalar_lea.vmem (!%p2004_p9), [#allocation2], %s1009_s23 }
  0x7d   : > { %1414 = dma.done.wait (%p2005_p0), %s295_s11, 256  }
  0x7e   : > { %1416 = vsyncadd (%p2005_p0), %s295_s11, 4294967040  ;;  %p2006_p11 = scmp.eq.s32.totalorder %s1516_s28, 0 }
  0x80   : > { %1418 = dma.done.wait (%p2006_p11), [#allocation6], 1280   ;;  %p2007_p8 = pmov %p2006_p11 }
  0x82   : > { %1420 = vsyncadd (%p2007_p8), [#allocation6], 4294966016  ;;  %p2008_p13 = pmov %p2007_p8 }
  0x83   : > { %p2009_p6 = pmov %p2007_p8 }
  0x84   : > { %1422 = dma.done.wait (%p2008_p13), [#allocation9], 2048  }
  0x85   : > { %1424 = vsyncadd (%p2009_p6), [#allocation9], 4294965248  ;;  %v372_v0 = vld [vmem:[#allocation5] sm:$0xff]  ;;  %v373_v1 = vld [vmem:[#allocation5 + $0x8] sm:$0xff]  ;;  %vm387_vm0 = vcmask 523264   ;;  %s1451_s13 = smov 8   ;;  %v341_v33 = vlaneseq }
  0x86   : > { %v374_v2 = vld [vmem:[#allocation5 + $0x10] sm:$0xff]  ;;  %v1125_v3 = vpack.c.bf16 %v373_v1, %v372_v0  ;;  %v375_v4 = vld [vmem:[#allocation5 + $0x18] sm:$0xff]  ;;  %v376_v6 = vld [vmem:[#allocation5 + $0x20] sm:$0xff]  ;;  %vm474_vm1 = vcmask 1040384   ;;  %vm579_vm2 = vcmask 1046528   ;;  %s1452_s15 = smov 120  }
  0x87   : > { %v1129_v5 = vpack.c.bf16 %v375_v4, %v374_v2  ;;  %v377_v7 = vld [vmem:[#allocation5 + $0x28] sm:$0xff]  ;;  %v370_v8 = vld [vmem:[%s298_s8] sm:$0xff]  ;;  %v379_v11 = vld [vmem:[#allocation5 + $0x38] sm:$0xff]  ;;  %v345_v34 = vand.u32 127, %v341_v33  ;;  %v342_v35 = vshrl.u32 %v341_v33, 7  ;;  %s1042_s9 = sshll.u32 %s1516_s28, 8 }
  0x88   : > { %1126 = vmatprep.subr.bf16.mxu0 %v1125_v3  ;;  %1087 = vmatprep.mubr.msk.f32.mxu0 %vm387_vm0, %v370_v8  ;;  %v1133_v9 = vpack.c.bf16 %v377_v7, %v376_v6  ;;  %v378_v10 = vld [vmem:[#allocation5 + $0x30] sm:$0xff]  ;;  %v371_v13 = vld [vmem:[%s298_s8 + $0x8] sm:$0xff]  ;;  %v1014_v14 = vld [vmem:[%s1985_s2] ss:$0 sm:$0xff]  ;;  %s340_s8 = scalar_lea.vmem [#allocation10], %s1009_s23  ;;  %s1938_s14 = scalar_lea.hbm %s1990_s7, %s1042_s9 }
  0x89   : > { %1128 = vmatpush3.bf16.msra.mxu0 %v1125_v3  ;;  %v1137_v12 = vpack.c.bf16 %v379_v11, %v378_v10  ;;  %v788_v27 = vld [vmem:[#allocation8] sm:$0xff]  ;;  %v789_v28 = vld [vmem:[#allocation8 + $0x8] sm:$0xff]  ;;  %v790_v29 = vld [vmem:[#allocation8 + $0x10] sm:$0xff]  ;;  %v1759_v36 = vadd.s32 4294967295, %v342_v35  ;;  %v1761_v37 = vadd.s32 4294967288, %v345_v34  ;;  %v1763_v38 = vadd.s32 8, %v345_v34 }
  0x8a   : > { %1130 = vmatprep.subr.bf16.mxu0 %v1129_v5  ;;  %v1141_v30 = vpack.c.bf16 %v789_v28, %v788_v27  ;;  %v791_v31 = vld [vmem:[#allocation8 + $0x18] sm:$0xff]  ;;  %v1017_v41 = vld [vmem:[#allocation7] ss:$0 sm:$0xff]  ;;  %v1019_v44 = vld [vmem:[#allocation7 + $0x1] ss:$0 sm:$0xff]  ;;  %v343_v50 = vadd.s32 8, %v342_v35 }
  0x8b   : > { %v1145_v32 = vpack.c.bf16 %v791_v31, %v790_v29  ;;  %vm348_vm3 = vcmp.ge.s32.totalorder %v1759_v36, 0  ;;  %vm355_vm4 = vcmp.ge.s32.totalorder %v1761_v37, 0  ;;  %vm368_vm6 = vcmp.lt.s32.totalorder %v1763_v38, 128  ;;  %v1018_v46 = vld [vmem:[%s1987_s4] ss:$0 sm:$0xff]  ;;  %s897_s30 = sshll.u32 %s340_s8, 4  ;;  %s1932_s30 = int_to_ptr.vmem [resolvable:$true] %s897_s30 }
  0x8c   : > { %1142 = vmatprep.subr.bf16.mxu1 %v1141_v30  ;;  %vm1771_vm5 = vmand %vm348_vm3, %vm355_vm4  ;;  %v1020_v55 = vld [vmem:[#allocation7 + $0x2] ss:$0 sm:$0xff]  ;;  %v1795_v60 = vadd.s32 1, %v343_v50  ;;  %v1021_v3 = vld [vmem:[#allocation7 + $0x3] ss:$0 sm:$0xff]  ;;  %s884_s23 = scalar_lea.sflag [#allocation4], %s1700_s17 }
  0x8d   : > { %1132 = vmatpush3.bf16.msra.mxu0 %v1129_v5  ;;  %1144 = vmatpush3.bf16.msra.mxu1 %v1141_v30  ;;  %vm1787_vm7 = vmand %vm348_vm3, %vm368_vm6  ;;  %v1022_v5 = vld [vmem:[#allocation7 + $0x4] ss:$0 sm:$0xff]  ;;  %v1030_v36 = vld [vmem:[%s1988_s5 + $0x3] ss:$0 sm:$0xff]  ;;  %s1369_s28 = scalar_lea.vmem %s1932_s30, 256  ;;  %s1453_s12 = smov [#allocation10]  }
  0x8e   : > { %1134 = vmatprep.subr.bf16.mxu0 %v1133_v9  ;;  %1146 = vmatprep.subr.bf16.mxu1 %v1145_v32  ;;  %vm363_vm8 = vcmp.lt.s32.totalorder %v1795_v60, 16  ;;  %v1032_v48 = vld [vmem:[%s1988_s5 + $0x5] ss:$0 sm:$0xff]  ;;  %p1370_p10 = scmp.ne.s32.totalorder %s1932_s30, %s1369_s28  ;;  %s1373_s20 = sshll.u32 %s1453_s12, 4  ;;  %s1374_s20 = int_to_ptr.vmem [resolvable:$false] %s1373_s20 }
  0x8f   : > { %vm1808_vm9 = vmand %vm363_vm8, %vm355_vm4  ;;  %s1375_s21 = scalar_lea.vmem %s1374_s20, 512  ;;  %p1376_p12 = scmp.lt.s32.totalorder %s1932_s30, %s1374_s20 }
  0x90   : > { %vm1824_vm10 = vmand %vm363_vm8, %vm368_vm6  ;;  %p1371_p3 = pnand %p1370_p10, %p1649_p5  ;;  %p1377_p1 = scmp.lt.s32.totalorder %s1375_s21, %s1369_s28 }
  0x91   : > { %1136 = vmatpush3.bf16.msra.mxu0 %v1133_v9  ;;  %1148 = vmatpush3.bf16.msra.mxu1 %v1145_v32  ;;  %v1024_v32 = vld [vmem:[#allocation7 + $0x6] ss:$0 sm:$0xff] }
  0x92   : > { %1138 = vmatprep.subr.bf16.mxu0 %v1137_v12  ;;  %p1372_p7 = pneg %p1371_p3  ;;  %p1378_p2 = por %p1377_p1, %p1376_p12 }
  0x94   : > { %p1379_p4 = pnand %p1378_p2, %p1372_p7 }
  0x95   : > { %1140 = vmatpush3.bf16.msra.mxu0 %v1137_v12 }
  0x98   : > { %1088 = vmatmul.mubr.msk.f32.vlgmr.msra.gmra.mrb[0].mxu0 %vm387_vm0, %v371_v13 }
 0x16b   : > { %v1089_v15 = vpop.f32.mrb[0].mxu0 }
 0x16c   : > { %v1723_v16 = vadd.f32 %v1089_v15, %v1014_v14  ;;  %v460_v17 = vpop.f32.mrb[1].mxu0 }
 0x16d   : > { %v1725_v18 = vadd.f32 %v1014_v14, %v460_v17 }
 0x16e   : > { %538 = vrot.lane.b32.xlu1 %v1723_v16, %s1451_s13  ;;  %v471_v19 = vrot.slane %v1723_v16, 7  ;;  %v581_v20 = vrot.slane %v1723_v16, 1  ;;  %v559_v28 = vmul.f32 %v1022_v5, %v1723_v16 }
 0x16f   : > { %v475_v21 = vrot.slane %v1725_v18, 7  ;;  %v580_v22 = vrot.slane %v1725_v18, 1  ;;  %v558_v17 = vmul.f32 %v1022_v5, %v1725_v18  ;;  %v799_v5 = vld [vmem:[#allocation8 + $0x58] sm:$0xff] }
 0x171   : > { %v479_v23 = vsel %vm474_vm1, %v471_v19, %v475_v21  ;;  %v476_v24 = vsel %vm474_vm1, %v475_v21, %v471_v19  ;;  %v1736_v25 = vsel %vm579_vm2, %v581_v20, %v580_v22  ;;  %v1739_v26 = vsel %vm579_vm2, %v580_v22, %v581_v20  ;;  %v792_v20 = vld [vmem:[#allocation8 + $0x20] sm:$0xff]  ;;  %v793_v21 = vld [vmem:[#allocation8 + $0x28] sm:$0xff]  ;;  %v1023_v22 = vld [vmem:[#allocation7 + $0x5] ss:$0 sm:$0xff] }
 0x172   : > { %517 = vrot.lane.b32.xlu1 %v479_v23, %s1452_s15  ;;  %481 = vrot.lane.b32.xlu0 %v479_v23, %s1451_s13  ;;  %v506_v45 = vsel %vm348_vm3, %v479_v23, 0.0  ;;  %v514_v62 = vmul.f32 %v1019_v44, %v476_v24  ;;  %v1149_v27 = vpack.c.bf16 %v793_v21, %v792_v20 }
 0x173   : > { %v513_v51 = vmul.f32 %v1019_v44, %v506_v45  ;;  %v1025_v44 = vld [vmem:[#allocation7 + $0x7] ss:$0 sm:$0xff] }
 0x174   : > { %1150 = vmatprep.subr.bf16.mxu1 %v1149_v27 }
 0x175   : > { %1152 = vmatpush3.bf16.msra.mxu1 %v1149_v27 }
 0x176   : > { %519 = vrot.lane.b32.xlu1 %v476_v24, %s1452_s15  ;;  %483 = vrot.lane.b32.xlu0 %v476_v24, %s1451_s13 }
 0x17a   : > { %564 = vrot.lane.b32.xlu1 %v1723_v16, %s1452_s15  ;;  %536 = vrot.lane.b32.xlu0 %v1725_v18, %s1451_s13 }
 0x17e   : > { %590 = vrot.lane.b32.xlu1 %v1736_v25, %s1451_s13  ;;  %562 = vrot.lane.b32.xlu0 %v1725_v18, %s1452_s15 }
 0x182   : > { %620 = vrot.lane.b32.xlu1 %v1736_v25, %s1452_s15  ;;  %588 = vrot.lane.b32.xlu0 %v1739_v26, %s1451_s13 }
 0x186   : > { %618 = vrot.lane.b32.xlu0 %v1739_v26, %s1452_s15 }
 0x1e0   : > { %v539_v39 = vpop.permute.xlu1 %538 }
 0x1e1   : > { %v543_v4 = vsel %vm355_vm4, %v539_v39, 0.0 }
 0x1e2   : > { %v550_v11 = vmul.f32 %v1021_v3, %v543_v4 }
 0x1e4   : > { %v518_v42 = vpop.permute.xlu1 %517  ;;  %v482_v43 = vpop.permute.xlu0 %481 }
 0x1e5   : > { %v489_v47 = vsel %vm1771_vm5, %v482_v43, 0.0  ;;  %v525_v56 = vsel %vm1787_vm7, %v518_v42, 0.0  ;;  %v795_v42 = vld [vmem:[#allocation8 + $0x38] sm:$0xff]  ;;  %v608_v43 = vsel %vm363_vm8, %v1736_v25, 0.0 }
 0x1e6   : > { %v496_v49 = vmul.f32 %v1017_v41, %v489_v47  ;;  %v532_v63 = vmul.f32 %v1020_v55, %v525_v56 }
 0x1e8   : > { %v504_v52 = vadd.f32 %v1018_v46, %v496_v49  ;;  %v520_v53 = vpop.permute.xlu1 %519  ;;  %v484_v54 = vpop.permute.xlu0 %483 }
 0x1e9   : > { %v490_v57 = vsel %vm355_vm4, %v484_v54, 0.0  ;;  %v526_v61 = vsel %vm368_vm6, %v520_v53, 0.0  ;;  %v615_v54 = vmul.f32 %v1025_v44, %v608_v43 }
 0x1ea   : > { %v515_v58 = vadd.f32 %v513_v51, %v504_v52  ;;  %v497_v59 = vmul.f32 %v1017_v41, %v490_v57  ;;  %v533_v7 = vmul.f32 %v1020_v55, %v526_v61  ;;  %v794_v41 = vld [vmem:[#allocation8 + $0x30] sm:$0xff]  ;;  %v1026_v52 = vld [vmem:[#allocation7 + $0x8] ss:$0 sm:$0xff]  ;;  %v614_v55 = vmul.f32 %v1025_v44, %v1739_v26 }
 0x1eb   : > { %v798_v26 = vld [vmem:[#allocation8 + $0x50] sm:$0xff] }
 0x1ec   : > { %v505_v0 = vadd.f32 %v1018_v46, %v497_v59  ;;  %v565_v1 = vpop.permute.xlu1 %564  ;;  %v537_v2 = vpop.permute.xlu0 %536  ;;  %v534_v9 = vadd.f32 %v532_v63, %v515_v58  ;;  %v1153_v46 = vpack.c.bf16 %v795_v42, %v794_v41  ;;  %v796_v58 = vld [vmem:[#allocation8 + $0x40] sm:$0xff]  ;;  %v797_v59 = vld [vmem:[#allocation8 + $0x48] sm:$0xff] }
 0x1ed   : > { %v542_v6 = vsel %vm355_vm4, %v537_v2, 0.0  ;;  %v569_v23 = vsel %vm368_vm6, %v565_v1, 0.0 }
 0x1ee   : > { %v516_v8 = vadd.f32 %v514_v62, %v505_v0  ;;  %v549_v10 = vmul.f32 %v1021_v3, %v542_v6  ;;  %v576_v34 = vmul.f32 %v1023_v22, %v569_v23  ;;  %1154 = vmatprep.subr.bf16.mxu1 %v1153_v46  ;;  %v1157_v62 = vpack.c.bf16 %v797_v59, %v796_v58 }
 0x1ef   : > { %1156 = vmatpush3.bf16.msra.mxu1 %v1153_v46 }
 0x1f0   : > { %v535_v12 = vadd.f32 %v533_v7, %v516_v8  ;;  %v551_v13 = vadd.f32 %v549_v10, %v534_v9  ;;  %v591_v15 = vpop.permute.xlu1 %590  ;;  %v563_v19 = vpop.permute.xlu0 %562  ;;  %1158 = vmatprep.subr.bf16.mxu1 %v1157_v62  ;;  %v1161_v8 = vpack.c.bf16 %v799_v5, %v798_v26 }
 0x1f1   : > { %v568_v24 = vsel %vm368_vm6, %v563_v19, 0.0  ;;  %v597_v18 = vsel %vm1808_vm9, %v591_v15, 0.0  ;;  %v802_v15 = vld [vmem:[#allocation8 + $0x70] sm:$0xff] }
 0x1f2   : > { %v552_v29 = vadd.f32 %v550_v11, %v535_v12  ;;  %v560_v30 = vadd.f32 %v558_v17, %v551_v13  ;;  %v575_v31 = vmul.f32 %v1023_v22, %v568_v24  ;;  %v604_v49 = vmul.f32 %v1024_v32, %v597_v18  ;;  %v800_v11 = vld [vmem:[#allocation8 + $0x60] sm:$0xff]  ;;  %v801_v12 = vld [vmem:[#allocation8 + $0x68] sm:$0xff]  ;;  %v803_v17 = vld [vmem:[#allocation8 + $0x78] sm:$0xff] }
 0x1f3   : > { %1160 = vmatpush3.bf16.msra.mxu1 %v1157_v62  ;;  %v1165_v13 = vpack.c.bf16 %v801_v12, %v800_v11  ;;  %v1169_v19 = vpack.c.bf16 %v803_v17, %v802_v15  ;;  %v1034_v11 = vld [vmem:[%s1988_s5 + $0x7] ss:$0 sm:$0xff] }
 0x1f4   : > { %v561_v33 = vadd.f32 %v559_v28, %v552_v29  ;;  %v621_v39 = vpop.permute.xlu1 %620  ;;  %v589_v16 = vpop.permute.xlu0 %588  ;;  %v577_v50 = vadd.f32 %v575_v31, %v560_v30  ;;  %1162 = vmatprep.subr.bf16.mxu1 %v1161_v8  ;;  %v1027_v28 = vld [vmem:[%s1988_s5] ss:$0 sm:$0xff]  ;;  %v1028_v31 = vld [vmem:[%s1988_s5 + $0x1] ss:$0 sm:$0xff] }
 0x1f5   : > { %v596_v45 = vsel %vm355_vm4, %v589_v16, 0.0  ;;  %v627_v53 = vsel %vm1824_vm10, %v621_v39, 0.0  ;;  %v1029_v16 = vld [vmem:[%s1988_s5 + $0x2] ss:$0 sm:$0xff] }
 0x1f6   : > { %v578_v47 = vadd.f32 %v576_v34, %v561_v33  ;;  %v603_v51 = vmul.f32 %v1024_v32, %v596_v45  ;;  %v634_v0 = vmul.f32 %v1026_v52, %v627_v53  ;;  %v1031_v53 = vld [vmem:[%s1988_s5 + $0x4] ss:$0 sm:$0xff] }
 0x1f7   : > { %1164 = vmatpush3.bf16.msra.mxu1 %v1161_v8 }
 0x1f8   : > { %v606_v56 = vadd.f32 %v604_v49, %v578_v47  ;;  %v605_v57 = vadd.f32 %v603_v51, %v577_v50  ;;  %v619_v25 = vpop.permute.xlu0 %618  ;;  %1166 = vmatprep.subr.bf16.mxu1 %v1165_v13 }
 0x1f9   : > { %v626_v61 = vsel %vm368_vm6, %v619_v25, 0.0 }
 0x1fa   : > { %v617_v63 = vadd.f32 %v615_v54, %v606_v56  ;;  %v616_v1 = vadd.f32 %v614_v55, %v605_v57  ;;  %v633_v2 = vmul.f32 %v1026_v52, %v626_v61 }
 0x1fb   : > { %1168 = vmatpush3.bf16.msra.mxu1 %v1165_v13 }
 0x1fc   : > { %v1838_v3 = vadd.f32 %v634_v0, %v617_v63  ;;  %v1840_v4 = vadd.f32 %v633_v2, %v616_v1  ;;  %1170 = vmatprep.subr.bf16.mxu1 %v1169_v19  ;;  %v1033_v2 = vld [vmem:[%s1988_s5 + $0x6] ss:$0 sm:$0xff] }
 0x1fe   : > { %692 = vrot.lane.b32.xlu0 %v1840_v4, %s1451_s13  ;;  %694 = vrot.lane.b32.xlu1 %v1838_v3, %s1451_s13  ;;  %v638_v6 = vrot.slane %v1838_v3, 7  ;;  %v641_v7 = vrot.slane %v1840_v4, 7  ;;  %v735_v20 = vrot.slane %v1840_v4, 1  ;;  %v736_v21 = vrot.slane %v1838_v3, 1 }
 0x1ff   : > { %1172 = vmatpush3.bf16.msra.mxu1 %v1169_v19  ;;  %v714_v0 = vmul.f32 %v1031_v53, %v1840_v4  ;;  %v715_v1 = vmul.f32 %v1031_v53, %v1838_v3 }
 0x200   : > { %v645_v9 = vsel %vm474_vm1, %v638_v6, %v641_v7  ;;  %v642_v10 = vsel %vm474_vm1, %v641_v7, %v638_v6  ;;  %v1861_v22 = vsel %vm579_vm2, %v735_v20, %v736_v21  ;;  %v741_v23 = vsel %vm579_vm2, %v736_v21, %v735_v20  ;;  %v1035_v21 = vld [vmem:[%s1988_s5 + $0x8] ss:$0 sm:$0xff] }
 0x201   : > { %v664_v32 = vsel %vm348_vm3, %v645_v9, 0.0  ;;  %v672_v42 = vmul.f32 %v1028_v31, %v642_v10  ;;  %v767_v37 = vmul.f32 %v1034_v11, %v1861_v22 }
 0x202   : > { %647 = vrot.lane.b32.xlu0 %v645_v9, %s1451_s13  ;;  %649 = vrot.lane.b32.xlu1 %v642_v10, %s1451_s13  ;;  %v671_v41 = vmul.f32 %v1028_v31, %v664_v32 }
 0x206   : > { %675 = vrot.lane.b32.xlu0 %v645_v9, %s1452_s15  ;;  %677 = vrot.lane.b32.xlu1 %v642_v10, %s1452_s15  ;;  %v761_v10 = vsel %vm363_vm8, %v741_v23, 0.0 }
 0x207   : > { %v768_v60 = vmul.f32 %v1034_v11, %v761_v10 }
 0x20a   : > { %718 = vrot.lane.b32.xlu0 %v1840_v4, %s1452_s15  ;;  %720 = vrot.lane.b32.xlu1 %v1838_v3, %s1452_s15 }
 0x20e   : > { %743 = vrot.lane.b32.xlu0 %v1861_v22, %s1451_s13  ;;  %745 = vrot.lane.b32.xlu1 %v741_v23, %s1451_s13 }
 0x212   : > { %771 = vrot.lane.b32.xlu0 %v1861_v22, %s1452_s15  ;;  %773 = vrot.lane.b32.xlu1 %v741_v23, %s1452_s15 }
 0x270   : > { %v693_v24 = vpop.permute.xlu0 %692  ;;  %v695_v27 = vpop.permute.xlu1 %694 }
 0x271   : > { %v698_v40 = vsel %vm355_vm4, %v693_v24, 0.0  ;;  %v699_v45 = vsel %vm355_vm4, %v695_v27, 0.0 }
 0x272   : > { %v705_v54 = vmul.f32 %v1030_v36, %v698_v40  ;;  %v706_v55 = vmul.f32 %v1030_v36, %v699_v45 }
 0x274   : > { %v648_v29 = vpop.permute.xlu0 %647  ;;  %v650_v30 = vpop.permute.xlu1 %649 }
 0x275   : > { %v653_v18 = vsel %vm1771_vm5, %v648_v29, 0.0  ;;  %v654_v33 = vsel %vm355_vm4, %v650_v30, 0.0 }
 0x276   : > { %v660_v34 = vmul.f32 %v1027_v28, %v653_v18  ;;  %v661_v39 = vmul.f32 %v1027_v28, %v654_v33 }
 0x278   : > { %v676_v43 = vpop.permute.xlu0 %675  ;;  %v678_v44 = vpop.permute.xlu1 %677  ;;  %v673_v49 = vadd.f32 %v671_v41, %v660_v34  ;;  %v674_v50 = vadd.f32 %v672_v42, %v661_v39 }
 0x279   : > { %v681_v46 = vsel %vm1787_vm7, %v676_v43, 0.0  ;;  %v682_v47 = vsel %vm368_vm6, %v678_v44, 0.0 }
 0x27a   : > { %v688_v51 = vmul.f32 %v1029_v16, %v681_v46  ;;  %v689_v52 = vmul.f32 %v1029_v16, %v682_v47 }
 0x27c   : > { %v690_v56 = vadd.f32 %v688_v51, %v673_v49  ;;  %v691_v57 = vadd.f32 %v689_v52, %v674_v50  ;;  %v719_v25 = vpop.permute.xlu0 %718  ;;  %v721_v58 = vpop.permute.xlu1 %720 }
 0x27d   : > { %v724_v59 = vsel %vm368_vm6, %v719_v25, 0.0  ;;  %v725_v61 = vsel %vm368_vm6, %v721_v58, 0.0 }
 0x27e   : > { %v707_v62 = vadd.f32 %v705_v54, %v690_v56  ;;  %v708_v63 = vadd.f32 %v706_v55, %v691_v57  ;;  %v731_v5 = vmul.f32 %v1032_v48, %v724_v59  ;;  %v732_v7 = vmul.f32 %v1032_v48, %v725_v61 }
 0x280   : > { %v716_v26 = vadd.f32 %v714_v0, %v707_v62  ;;  %v717_v6 = vadd.f32 %v715_v1, %v708_v63  ;;  %v744_v8 = vpop.permute.xlu0 %743  ;;  %v746_v9 = vpop.permute.xlu1 %745 }
 0x281   : > { %v749_v12 = vsel %vm355_vm4, %v744_v8, 0.0  ;;  %v750_v13 = vsel %vm1808_vm9, %v746_v9, 0.0 }
 0x282   : > { %v733_v15 = vadd.f32 %v731_v5, %v716_v26  ;;  %v734_v17 = vadd.f32 %v732_v7, %v717_v6  ;;  %v756_v19 = vmul.f32 %v1033_v2, %v749_v12  ;;  %v757_v20 = vmul.f32 %v1033_v2, %v750_v13 }
 0x284   : > { %v758_v23 = vadd.f32 %v756_v19, %v733_v15  ;;  %v759_v24 = vadd.f32 %v757_v20, %v734_v17  ;;  %v772_v27 = vpop.permute.xlu0 %771  ;;  %v774_v28 = vpop.permute.xlu1 %773 }
 0x285   : > { %v777_v14 = vsel %vm368_vm6, %v772_v27, 0.0  ;;  %v778_v29 = vsel %vm1824_vm10, %v774_v28, 0.0 }
 0x286   : > { %v784_v30 = vmul.f32 %v1035_v21, %v777_v14  ;;  %v770_v31 = vadd.f32 %v768_v60, %v759_v24  ;;  %v785_v32 = vmul.f32 %v1035_v21, %v778_v29  ;;  %v769_v18 = vadd.f32 %v767_v37, %v758_v23 }
 0x288   : > { %v787_v33 = vadd.f32 %v785_v32, %v770_v31  ;;  %v786_v34 = vadd.f32 %v784_v30, %v769_v18 }
 0x28a   : > { %1122 = vmatprep.mubr.f32.mxu1 %v786_v34 }
 0x28b   : > { %1123 = vmatmul.mubr.f32.vlgmr.msra.gmra.mrb[0].mxu1 %v787_v33 }
 0x35e   : > { %v1124_v22 = vpop.f32.mrb[0].mxu1 }
 0x35f   : > { %v880_v38 = vadd.f32 %v1124_v22, %v1838_v3  ;;  %v870_v35 = vpop.f32.mrb[1].mxu1 }
 0x360   : > { %v879_v39 = vadd.f32 %v870_v35, %v1840_v4 }
 0x361   : > { %882 = vst [vmem:[%s340_s8 + $0x8] sm:$0xff] %v880_v38 }
 0x362   : > { %881 = vst [vmem:[%s340_s8] sm:$0xff] %v879_v39 }
 0x363   : > { %1382 = shalt.err (!%p1379_p4)
}
 0x364   : > { %s1383_s16 = scalar_lea.hbm %s1938_s14, 256  ;;  %s1387_s8 = scalar_lea.hbm %s1990_s7, 512 }
 0x365   : > { %p1384_p9 = scmp.ne.s32.totalorder %s1938_s14, %s1383_s16  ;;  %p1388_p8 = scmp.lt.u32.totalorder %s1938_s14, %s1990_s7 }
 0x366   : > { %p1389_p13 = scmp.lt.u32.totalorder %s1387_s8, %s1383_s16  ;;  %p1391_p10 = scmp.lt.u32.totalorder %s1383_s16, %s1938_s14 }
 0x367   : > { %p1385_p0 = pnand %p1384_p9, %p1649_p5 }
 0x368   : > { %p1390_p6 = por %p1389_p13, %p1388_p8 }
 0x369   : > { %p1386_p11 = pneg %p1385_p0 }
 0x36a   : > { %p1392_p3 = por %p1391_p10, %p1390_p6 }
 0x36c   : > { %p1393_p7 = pnand %p1392_p3, %p1386_p11 }
 0x36e   : > { %1396 = shalt.err (!%p1393_p7)
}
 0x36f   : > { %s1454_s10 = smov 128  }
 0x370   : > { %1187 = dma.vmem_to_hbm [thread:$0]  (%p1649_p5), %s1932_s30, 256, %s1938_s14, %s884_s23, %s1454_s10, %s1454_s10, %s1451_s13  }
 0x371 PF: > { %s2018_s28 = sld [smem:[#allocation15_spill]]  ;;  %s912_s12 = sand.u32 1, %s1431_s24  }
 0x372   : > { %p2020_p1 = scmp.ge.s32.totalorder %s1443_s27, 2  ;;  %s913_s20 = scalar_lea.sflag [#allocation4], %s912_s12 }
 0x377   : > { %p2019_p12 = scmp.ne.s32.totalorder %s2018_s28, 0 }
 0x379   : > { %p1204_p2 = pnand %p2020_p1, %p2019_p12 }
 0x37b   : > { %1426 = dma.done.wait (!%p1204_p2), %s913_s20, 256  }
 0x37c   : > { %1428 = vsyncadd (!%p1204_p2), %s913_s20, 4294967040  ;;  %p22_p4 = scmp.ge.s32.totalorder %s1635_s22, 4   ;;  %s2021_s24 = smov %s1435_s25 }
 0x37d   : > { %s2022_s25 = smov %s1439_s26  ;;  %s2023_s26 = smov %s1645_s18 }
 0x37e   : > { %s2024_s27 = smov %s1635_s22  ;;  %24 = sbr.rel (!%p22_p4) target bundleno = 7 (0x7), region = 105 }
 0x385   :  { %918 = vsyncpa [#allocation3], 1 }
 0x386   :  { %920 = vsyncpa [#allocation3 + $0x1], 1 }
 0x387   :  { %921 = vsyncpa [#allocation6], 1 }
 0x388   :  { %922 = vsyncpa [#allocation9], 1 }
 0x389   :  { %923 = vsyncpa [#allocation4], 1 }
 0x38a   :  { %925 = vsyncpa [#allocation4 + $0x1], 1 }

</bundles_post_ra>
